<compile_context>
chip_gen: v6e
topology: v6e:2x2x1
jax: 0.10.0
libtpu: 0.0.40
codegen_flags: <defaults>
</compile_context>

<pallas_src>
import jax
import jax.numpy as jnp
from jax import lax
from jax.experimental import pallas as pl
from jax.experimental.pallas import tpu as pltpu


def _round_up(x, m):
    return ((x + m - 1) // m) * m


# ---------------------------------------------------------------------------
# Fused Pallas kernel: state MLP (x2) + action lookup + reward linear + transition MLP
# ---------------------------------------------------------------------------

def _fused_transition_kernel(idx_ref, wbig_ref, mbig_ref, act_ref, tw2_ref,
                             bias_ref, o_ref):
    """One batch tile of the whole TransitionEmbedder forward.

    idx_ref : (TB, 8) int32  -- [s_x, s_y, ns_x, ns_y, action, reward_bits, 0, 0]
    wbig_ref: (4V, 512) bf16 -- block-diag [[T,0],[0,T]], T = [tab0;tab1] @ state_w1
    mbig_ref: (512, 128) bf16 -- [state_w2 @ tw1_state ; state_w2 @ tw1_next] (fold)
    act_ref : (8, 128)  bf16 -- action_tab @ tw1_action slice (row-padded)
    tw2_ref : (128, 32) bf16 -- transition second Linear
    bias_ref: (4, 512)  f32  -- rows: [state_b1|state_b1], rwf, tb1', trans_b2 (padded)
    o_ref   : (TB, 32)  f32
    """
    f32, bf16 = jnp.float32, jnp.bfloat16

    tb = idx_ref.shape[0]
    four_v = wbig_ref.shape[0]          # 4 * grid_size
    v = four_v // 4
    n_act = act_ref.shape[0]
    th = mbig_ref.shape[1]              # 128 transition hidden
    ncols = o_ref.shape[1]              # embed_dim

    idx = idx_ref[...]                                   # (TB, 8) int32
    rew = pltpu.bitcast(idx, f32)[:, 5:6]                # reward back to f32, (TB, 1)

    # "Four-hot" LHS: one row selects tab0[x], tab1[y], tab0[nx], tab1[ny] of the
    # block-diagonal folded first layer in a single MXU pass (shared state embedder).
    iota_s = lax.broadcasted_iota(jnp.int32, (tb, four_v), 1)
    fh = ((idx[:, 0:1] == iota_s)
          | (idx[:, 1:2] + v == iota_s)
          | (idx[:, 2:3] + 2 * v == iota_s)
          | (idx[:, 3:4] + 3 * v == iota_s)).astype(bf16)          # (TB, 64)

    iota_a = lax.broadcasted_iota(jnp.int32, (tb, n_act), 1)
    ah = (idx[:, 4:5] == iota_a).astype(bf16)                       # (TB, 8)

    b_big = bias_ref[0:1, :]             # (1, 512)  [state_b1 | state_b1]
    rwf = bias_ref[1:2, :]               # (1, 512)  reward FMA row in [:, :th]
    tb1 = bias_ref[2:3, :]               # (1, 512)  folded transition bias in [:, :th]
    tb2 = bias_ref[3:4, :]               # (1, 512)  trans_b2 in [:, :ncols]

    # Shared state-MLP first layer for state & next_state in one matmul + one ReLU.
    h = jnp.dot(fh, wbig_ref[...], preferred_element_type=f32)      # (TB, 512)
    h = jnp.maximum(h + b_big, 0.0)                                 # f32 on the VPU

    # Transition first Linear with state_w2 pre-folded in, + action lookup matmul,
    # + exact f32 reward FMA, + folded bias, ReLU.
    t = jnp.dot(h.astype(bf16), mbig_ref[...], preferred_element_type=f32)   # (TB,128)
    t = t + jnp.dot(ah, act_ref[...], preferred_element_type=f32)
    t = t + rew * rwf[:, :th]
    t = jnp.maximum(t + tb1[:, :th], 0.0)

    out = jnp.dot(t.astype(bf16), tw2_ref[...],
                  preferred_element_type=f32) + tb2[:, :ncols]
    o_ref[...] = out.astype(o_ref.dtype)


# ---------------------------------------------------------------------------
# Wrapper: packing, batch tiling, pallas_call
# ---------------------------------------------------------------------------

def transition_embedder_forward(folded, state_obs, next_state_obs, action, reward,
                                *, block_b=1024):
    """TransitionEmbedder.forward with pre-folded params (see fold_params).

    state_obs / next_state_obs: int32 (B, 2) grid coordinates in [0, grid_size)
    action:                     int32 (B,)   in [0, num_actions)
    reward:                     float32 (B,)
    returns:                    float32 (B, embed_dim)
    """
    batch = state_obs.shape[0]
    embed_dim = folded["tw2"].shape[1]

    # Pack ALL per-row inputs into one (B, 8) int32 slab (reward f32 bits in col 5).
    rew_bits = lax.bitcast_convert_type(reward.astype(jnp.float32), jnp.int32)
    idx = jnp.concatenate(
        [state_obs.astype(jnp.int32),
         next_state_obs.astype(jnp.int32),
         action.astype(jnp.int32)[:, None],
         rew_bits[:, None],
         jnp.zeros((batch, 2), jnp.int32)], axis=-1)               # (B, 8)

    # Batch tile: multiple of 16 (bf16 sublane packing); sized so the grid has >=2
    # steps whenever possible (keeps v7x's second TensorCore busy); capped by block_b
    # so VMEM stays well under v7x's 64 MiB.
    tb = _round_up(pl.cdiv(batch, 2), 16)
    tb = max(16, min(tb, _round_up(block_b, 16)))
    b_pad = _round_up(batch, tb)
    if b_pad != batch:
        idx = jnp.pad(idx, ((0, b_pad - batch), (0, 0)))           # index/reward 0 valid
    grid = (b_pad // tb,)

    weights = (folded["wbig"], folded["mbig"], folded["act"], folded["tw2"],
               folded["bias"])
    row_spec = pl.BlockSpec((tb, idx.shape[1]), lambda i: (i, 0))
    full_spec = lambda w: pl.BlockSpec(w.shape, lambda i: (0, 0))  # VMEM-resident
    in_specs = [row_spec] + [full_spec(w) for w in weights]
    out_specs = pl.BlockSpec((tb, embed_dim), lambda i: (i, 0))

    # Advisory cost estimate (per-row flops of the folded network + IO bytes).
    kv, h1 = folded["wbig"].shape                                   # (64, 512)
    th = folded["mbig"].shape[1]                                    # 128
    a_pad = folded["act"].shape[0]
    flops_row = 2 * (kv * h1 + h1 * th + a_pad * th + th * embed_dim)
    w_bytes = sum(int(w.size) * w.dtype.itemsize for w in weights)
    io_bytes = b_pad * (idx.shape[1] * 4 + embed_dim * 4) + w_bytes

    out = pl.pallas_call(
        _fused_transition_kernel,
        out_shape=jax.ShapeDtypeStruct((b_pad, embed_dim), jnp.float32),
        grid_spec=pltpu.PrefetchScalarGridSpec(
            num_scalar_prefetch=0, grid=grid,
            in_specs=in_specs, out_specs=out_specs),
        compiler_params=pltpu.CompilerParams(
            dimension_semantics=("parallel",),                     # both TCs on v7x
            vmem_limit_bytes=32 * 1024 * 1024),                    # v5e default is 16 MiB
        cost_estimate=pl.CostEstimate(flops=int(flops_row) * int(b_pad),
                                      transcendentals=0,
                                      bytes_accessed=int(io_bytes)),
    )(idx, *weights)
    return out[:batch]


# ---------------------------------------------------------------------------
# Parameters (PyTorch-module layout) + one-time algebraic folding
# ---------------------------------------------------------------------------

def init_params(key, grid_size=16, hidden=32, state_embed_dim=32,
                num_actions=4, action_embed_dim=16, reward_embed_dim=8,
                embed_dim=32):
    ks = jax.random.split(key, 14)
    n = lambda k, shape: jax.random.normal(k, shape, jnp.float32) * 0.02
    in_dim = state_embed_dim * 2 + action_embed_dim + reward_embed_dim
    return {
        # SimpleGridStateEmbedder
        "state_tab0": n(ks[0], (grid_size, hidden)),
        "state_tab1": n(ks[1], (grid_size, hidden)),
        "state_w1": n(ks[2], (hidden * 2, 256)),
        "state_b1": n(ks[3], (1, 256)),
        "state_w2": n(ks[4], (256, state_embed_dim)),
        "state_b2": n(ks[5], (1, state_embed_dim)),
        # FixedVocabEmbedder (actions)
        "action_tab": n(ks[6], (num_actions, action_embed_dim)),
        # LinearEmbedder (reward)
        "reward_w": n(ks[7], (1, reward_embed_dim)),
        "reward_b": n(ks[8], (1, reward_embed_dim)),
        # TransitionEmbedder MLP
        "trans_w1": n(ks[9], (in_dim, 128)),
        "trans_b1": n(ks[10], (1, 128)),
        "trans_w2": n(ks[11], (128, embed_dim)),
        "trans_b2": n(ks[12], (1, embed_dim)),
    }


def fold_params(p, matmul_dtype=jnp.bfloat16):
    """One-time algebraic folding (all products in f32, cast to bf16 exactly once):

      * state_tab{0,1} @ state_w1 K-slices -> the gather tables ARE the first Linear;
        stacked and block-diagonalized so state & next_state share ONE matmul.
      * state_w2 @ trans_w1 K-slices       -> state second Linear disappears into the
        transition first Linear (mbig); state_b2 @ slices folded into tb1'.
      * action_tab @ trans_w1 K-slice      -> action embedder + its matmul = one lookup.
      * reward Linear folded to a single (1,128) FMA row; its bias folded into tb1'.
      * All small f32 rows packed into one (4, 512) bias slab.
    """
    f32 = jnp.float32
    h = p["state_tab0"].shape[1]              # 32 per-coordinate hidden
    sdim = p["state_w2"].shape[1]             # 32 state embed dim
    adim = p["action_tab"].shape[1]           # 16 action embed dim
    w1 = p["state_w1"].astype(f32)
    t1 = p["trans_w1"].astype(f32)
    sw2 = p["state_w2"].astype(f32)
    sb2 = p["state_b2"].astype(f32)

    # Folded state first layer, stacked: [tab0 @ w1[:h] ; tab1 @ w1[h:]]  -> (2V, 256)
    st = jnp.concatenate([p["state_tab0"].astype(f32) @ w1[:h],
                          p["state_tab1"].astype(f32) @ w1[h:]], axis=0)
    zeros = jnp.zeros_like(st)
    wbig = jnp.concatenate(
        [jnp.concatenate([st, zeros], axis=1),
         jnp.concatenate([zeros, st], axis=1)], axis=0)             # (4V, 512) block-diag

    t1a = t1[:sdim]                          # state slice of trans_w1
    t1b = t1[sdim:2 * sdim]                  # next-state slice
    t1act = t1[2 * sdim:2 * sdim + adim]     # action slice
    t1rew = t1[2 * sdim + adim:]             # reward slice
    mbig = jnp.concatenate([sw2 @ t1a, sw2 @ t1b], axis=0)          # (512, 128)

    act = p["action_tab"].astype(f32) @ t1act                       # (A, 128)
    a_pad = _round_up(act.shape[0], 8)
    act = jnp.pad(act, ((0, a_pad - act.shape[0]), (0, 0)))

    rwf = p["reward_w"].astype(f32) @ t1rew                         # (1, 128)
    tb1 = (p["trans_b1"].astype(f32) + p["reward_b"].astype(f32) @ t1rew
           + sb2 @ t1a + sb2 @ t1b)                                 # (1, 128)

    b_big = jnp.concatenate([p["state_b1"].astype(f32)] * 2, axis=1)  # (1, 512)
    n_lane = b_big.shape[1]
    pad_row = lambda r: jnp.pad(r, ((0, 0), (0, n_lane - r.shape[1])))
    bias = jnp.concatenate(
        [b_big, pad_row(rwf), pad_row(tb1),
         pad_row(p["trans_b2"].astype(f32))], axis=0)               # (4, 512) f32

    return {"wbig": wbig.astype(matmul_dtype),
            "mbig": mbig.astype(matmul_dtype),
            "act": act.astype(matmul_dtype),
            "tw2": p["trans_w2"].astype(matmul_dtype),
            "bias": bias}


# ---------------------------------------------------------------------------
# Pure-JAX reference (unfolded weights, f32) mirroring the PyTorch module
# ---------------------------------------------------------------------------

def reference_forward(p, s, ns, a, r):
    def state_embed(obs):
        cat = jnp.concatenate([p["state_tab0"][obs[:, 0]], p["state_tab1"][obs[:, 1]]], -1)
        h = jnp.maximum(cat @ p["state_w1"] + p["state_b1"], 0.0)
        return h @ p["state_w2"] + p["state_b2"]
    se, nse = state_embed(s), state_embed(ns)
    ae = p["action_tab"][a]
    re = r[:, None] @ p["reward_w"] + p["reward_b"]
    cat = jnp.concatenate([se, nse, ae, re], -1)
    h = jnp.maximum(cat @ p["trans_w1"] + p["trans_b1"], 0.0)
    return h @ p["trans_w2"] + p["trans_b2"]


if __name__ == "__main__":
    key = jax.random.PRNGKey(0)
    k_param, k_s, k_ns, k_a, k_r = jax.random.split(key, 5)

    batch, grid_size, num_actions = 64, 16, 4
    params = init_params(k_param, grid_size=grid_size, num_actions=num_actions)
    folded = fold_params(params)

    # Synthetic "experiences": (state.observation, next_state.observation, action, prev_reward)
    state_obs = jax.random.randint(k_s, (batch, 2), 0, grid_size, dtype=jnp.int32)
    next_state_obs = jax.random.randint(k_ns, (batch, 2), 0, grid_size, dtype=jnp.int32)
    action = jax.random.randint(k_a, (batch,), 0, num_actions, dtype=jnp.int32)
    reward = jax.random.normal(k_r, (batch,), jnp.float32)

    # With batch=64 the tile picker gives TB=32 -> a 2-step batch grid (exercises the
    # pipeline and v7x's 2-TC sharding). At production batch sizes TB caps at block_b
    # (default 1024; sweep up to ~4096 while staying inside v7x's 64 MiB VMEM).
    fwd = jax.jit(transition_embedder_forward)
    out = jax.block_until_ready(fwd(folded, state_obs, next_state_obs, action, reward))

    ref = reference_forward(params, state_obs, next_state_obs, action, reward)
    assert out.shape == (batch, 32), out.shape
    max_err = float(jnp.max(jnp.abs(out - ref)))
    assert jnp.allclose(out, ref, atol=1e-3, rtol=1e-3), max_err

    print("KERNEL_OK")
</pallas_src>

<mosaic_0001>
module attributes {stable_mosaic.version = 11 : i64} {
  func.func @_fused_transition_kernel(%arg0: i32, %arg1: memref<32x8xi32, #tpu.memory_space<vmem>>, %arg2: memref<64x512xbf16, #tpu.memory_space<vmem>>, %arg3: memref<512x128xbf16, #tpu.memory_space<vmem>>, %arg4: memref<8x128xbf16, #tpu.memory_space<vmem>>, %arg5: memref<128x32xbf16, #tpu.memory_space<vmem>>, %arg6: memref<4x512xf32, #tpu.memory_space<vmem>>, %arg7: memref<32x32xf32, #tpu.memory_space<vmem>>) attributes {dimension_semantics = [#tpu.dimension_semantics<parallel>], iteration_bounds = array<i64: 2>, scalar_prefetch = 0 : i64, scratch_operands = 0 : i64, tpu.core_type = #tpu.core_type<tc>, window_params = [{transform_indices = @transform_0, window_bounds = array<i64: 32, 8>}, {pipeline_mode = #tpu.pipeline_mode<synchronous>, transform_indices = @transform_1, window_bounds = array<i64: 64, 512>}, {pipeline_mode = #tpu.pipeline_mode<synchronous>, transform_indices = @transform_2, window_bounds = array<i64: 512, 128>}, {pipeline_mode = #tpu.pipeline_mode<synchronous>, transform_indices = @transform_3, window_bounds = array<i64: 8, 128>}, {pipeline_mode = #tpu.pipeline_mode<synchronous>, transform_indices = @transform_4, window_bounds = array<i64: 128, 32>}, {pipeline_mode = #tpu.pipeline_mode<synchronous>, transform_indices = @transform_5, window_bounds = array<i64: 4, 512>}, {transform_indices = @transform_6, window_bounds = array<i64: 32, 32>}]} {
    %c0 = arith.constant 0 : index
    %c0_0 = arith.constant 0 : index
    %0 = vector.load %arg1[%c0, %c0_0] : memref<32x8xi32, #tpu.memory_space<vmem>>, vector<32x8xi32>
    %1 = tpu.bitcast %0 : vector<32x8xi32> -> vector<32x8xf32>
    %2 = vector.extract_strided_slice %1 {offsets = [0, 5], sizes = [32, 1], strides = [1, 1]} : vector<32x8xf32> to vector<32x1xf32>
    %3 = tpu.iota {dimensions = array<i32: 1>} : vector<32x64xi32>
    %4 = vector.extract_strided_slice %0 {offsets = [0, 0], sizes = [32, 1], strides = [1, 1]} : vector<32x8xi32> to vector<32x1xi32>
    %5 = vector.broadcast %4 : vector<32x1xi32> to vector<32x64xi32>
    %6 = arith.cmpi eq, %5, %3 : vector<32x64xi32>
    %7 = vector.extract_strided_slice %0 {offsets = [0, 1], sizes = [32, 1], strides = [1, 1]} : vector<32x8xi32> to vector<32x1xi32>
    %c16_i32 = arith.constant 16 : i32
    %8 = vector.broadcast %c16_i32 : i32 to vector<32x1xi32>
    %9 = arith.addi %7, %8 : vector<32x1xi32>
    %10 = vector.broadcast %9 : vector<32x1xi32> to vector<32x64xi32>
    %11 = arith.cmpi eq, %10, %3 : vector<32x64xi32>
    %12 = arith.ori %6, %11 : vector<32x64xi1>
    %13 = vector.extract_strided_slice %0 {offsets = [0, 2], sizes = [32, 1], strides = [1, 1]} : vector<32x8xi32> to vector<32x1xi32>
    %c32_i32 = arith.constant 32 : i32
    %14 = vector.broadcast %c32_i32 : i32 to vector<32x1xi32>
    %15 = arith.addi %13, %14 : vector<32x1xi32>
    %16 = vector.broadcast %15 : vector<32x1xi32> to vector<32x64xi32>
    %17 = arith.cmpi eq, %16, %3 : vector<32x64xi32>
    %18 = arith.ori %12, %17 : vector<32x64xi1>
    %19 = vector.extract_strided_slice %0 {offsets = [0, 3], sizes = [32, 1], strides = [1, 1]} : vector<32x8xi32> to vector<32x1xi32>
    %c48_i32 = arith.constant 48 : i32
    %20 = vector.broadcast %c48_i32 : i32 to vector<32x1xi32>
    %21 = arith.addi %19, %20 : vector<32x1xi32>
    %22 = vector.broadcast %21 : vector<32x1xi32> to vector<32x64xi32>
    %23 = arith.cmpi eq, %22, %3 : vector<32x64xi32>
    %24 = arith.ori %18, %23 : vector<32x64xi1>
    %25 = arith.extui %24 : vector<32x64xi1> to vector<32x64xi32>
    %26 = arith.sitofp %25 : vector<32x64xi32> to vector<32x64xf32>
    %27 = arith.truncf %26 : vector<32x64xf32> to vector<32x64xbf16>
    %28 = tpu.iota {dimensions = array<i32: 1>} : vector<32x8xi32>
    %29 = vector.extract_strided_slice %0 {offsets = [0, 4], sizes = [32, 1], strides = [1, 1]} : vector<32x8xi32> to vector<32x1xi32>
    %30 = vector.broadcast %29 : vector<32x1xi32> to vector<32x8xi32>
    %31 = arith.cmpi eq, %30, %28 : vector<32x8xi32>
    %32 = arith.extui %31 : vector<32x8xi1> to vector<32x8xi32>
    %33 = arith.sitofp %32 : vector<32x8xi32> to vector<32x8xf32>
    %34 = arith.truncf %33 : vector<32x8xf32> to vector<32x8xbf16>
    %c0_1 = arith.constant 0 : index
    %c0_2 = arith.constant 0 : index
    %35 = vector.load %arg6[%c0_1, %c0_2] : memref<4x512xf32, #tpu.memory_space<vmem>>, vector<1x512xf32>
    %c1 = arith.constant 1 : index
    %c0_3 = arith.constant 0 : index
    %36 = vector.load %arg6[%c1, %c0_3] : memref<4x512xf32, #tpu.memory_space<vmem>>, vector<1x512xf32>
    %c2 = arith.constant 2 : index
    %c0_4 = arith.constant 0 : index
    %37 = vector.load %arg6[%c2, %c0_4] : memref<4x512xf32, #tpu.memory_space<vmem>>, vector<1x512xf32>
    %c3 = arith.constant 3 : index
    %c0_5 = arith.constant 0 : index
    %38 = vector.load %arg6[%c3, %c0_5] : memref<4x512xf32, #tpu.memory_space<vmem>>, vector<1x512xf32>
    %c0_6 = arith.constant 0 : index
    %c0_7 = arith.constant 0 : index
    %39 = vector.load %arg2[%c0_6, %c0_7] : memref<64x512xbf16, #tpu.memory_space<vmem>>, vector<64x512xbf16>
    %cst = arith.constant dense<0.000000e+00> : vector<32x512xf32>
    %40 = tpu.matmul %27, %39, %cst {dimension_numbers = #tpu.dot_dimension_numbers<[1], [0], [0], [1], [0, 0, 1, 1], [], []>} : vector<32x64xbf16>, vector<64x512xbf16>, vector<32x512xf32> -> vector<32x512xf32>
    %41 = vector.broadcast %35 : vector<1x512xf32> to vector<32x512xf32>
    %42 = arith.addf %40, %41 : vector<32x512xf32>
    %cst_8 = arith.constant 0.000000e+00 : f32
    %43 = vector.broadcast %cst_8 : f32 to vector<32x512xf32>
    %44 = arith.maximumf %42, %43 : vector<32x512xf32>
    %45 = arith.truncf %44 : vector<32x512xf32> to vector<32x512xbf16>
    %c0_9 = arith.constant 0 : index
    %c0_10 = arith.constant 0 : index
    %46 = vector.load %arg3[%c0_9, %c0_10] : memref<512x128xbf16, #tpu.memory_space<vmem>>, vector<512x128xbf16>
    %cst_11 = arith.constant dense<0.000000e+00> : vector<32x128xf32>
    %47 = tpu.matmul %45, %46, %cst_11 {dimension_numbers = #tpu.dot_dimension_numbers<[1], [0], [0], [1], [0, 0, 1, 1], [], []>} : vector<32x512xbf16>, vector<512x128xbf16>, vector<32x128xf32> -> vector<32x128xf32>
    %c0_12 = arith.constant 0 : index
    %c0_13 = arith.constant 0 : index
    %48 = vector.load %arg4[%c0_12, %c0_13] : memref<8x128xbf16, #tpu.memory_space<vmem>>, vector<8x128xbf16>
    %cst_14 = arith.constant dense<0.000000e+00> : vector<32x128xf32>
    %49 = tpu.matmul %34, %48, %cst_14 {dimension_numbers = #tpu.dot_dimension_numbers<[1], [0], [0], [1], [0, 0, 1, 1], [], []>} : vector<32x8xbf16>, vector<8x128xbf16>, vector<32x128xf32> -> vector<32x128xf32>
    %50 = arith.addf %47, %49 : vector<32x128xf32>
    %51 = vector.extract_strided_slice %36 {offsets = [0, 0], sizes = [1, 128], strides = [1, 1]} : vector<1x512xf32> to vector<1x128xf32>
    %52 = vector.broadcast %2 : vector<32x1xf32> to vector<32x128xf32>
    %53 = vector.broadcast %51 : vector<1x128xf32> to vector<32x128xf32>
    %54 = arith.mulf %52, %53 : vector<32x128xf32>
    %55 = arith.addf %50, %54 : vector<32x128xf32>
    %56 = vector.extract_strided_slice %37 {offsets = [0, 0], sizes = [1, 128], strides = [1, 1]} : vector<1x512xf32> to vector<1x128xf32>
    %57 = vector.broadcast %56 : vector<1x128xf32> to vector<32x128xf32>
    %58 = arith.addf %55, %57 : vector<32x128xf32>
    %cst_15 = arith.constant 0.000000e+00 : f32
    %59 = vector.broadcast %cst_15 : f32 to vector<32x128xf32>
    %60 = arith.maximumf %58, %59 : vector<32x128xf32>
    %61 = arith.truncf %60 : vector<32x128xf32> to vector<32x128xbf16>
    %c0_16 = arith.constant 0 : index
    %c0_17 = arith.constant 0 : index
    %62 = vector.load %arg5[%c0_16, %c0_17] : memref<128x32xbf16, #tpu.memory_space<vmem>>, vector<128x32xbf16>
    %cst_18 = arith.constant dense<0.000000e+00> : vector<32x32xf32>
    %63 = tpu.matmul %61, %62, %cst_18 {dimension_numbers = #tpu.dot_dimension_numbers<[1], [0], [0], [1], [0, 0, 1, 1], [], []>} : vector<32x128xbf16>, vector<128x32xbf16>, vector<32x32xf32> -> vector<32x32xf32>
    %64 = vector.extract_strided_slice %38 {offsets = [0, 0], sizes = [1, 32], strides = [1, 1]} : vector<1x512xf32> to vector<1x32xf32>
    %65 = vector.broadcast %64 : vector<1x32xf32> to vector<32x32xf32>
    %66 = arith.addf %63, %65 : vector<32x32xf32>
    %c0_19 = arith.constant 0 : index
    %c0_20 = arith.constant 0 : index
    %67 = vector.load %arg7[%c0_19, %c0_20] : memref<32x32xf32, #tpu.memory_space<vmem>>, vector<32x32xf32>
    tpu.vector_store %arg7[%c0_19, %c0_20], %66 {strides = array<i32>} : memref<32x32xf32, #tpu.memory_space<vmem>>, vector<32x32xf32>,
    return
  }
  func.func @transform_0(%arg0: i32) -> (i32, i32) {
    %c0_i32 = arith.constant 0 : i32
    %c0_i32_0 = arith.constant 0 : i32
    return %arg0, %c0_i32 : i32, i32
  }
  func.func @transform_1(%arg0: i32) -> (i32, i32) {
    %c0_i32 = arith.constant 0 : i32
    %c0_i32_0 = arith.constant 0 : i32
    %c0_i32_1 = arith.constant 0 : i32
    return %c0_i32, %c0_i32_0 : i32, i32
  }
  func.func @transform_2(%arg0: i32) -> (i32, i32) {
    %c0_i32 = arith.constant 0 : i32
    %c0_i32_0 = arith.constant 0 : i32
    %c0_i32_1 = arith.constant 0 : i32
    return %c0_i32, %c0_i32_0 : i32, i32
  }
  func.func @transform_3(%arg0: i32) -> (i32, i32) {
    %c0_i32 = arith.constant 0 : i32
    %c0_i32_0 = arith.constant 0 : i32
    %c0_i32_1 = arith.constant 0 : i32
    return %c0_i32, %c0_i32_0 : i32, i32
  }
  func.func @transform_4(%arg0: i32) -> (i32, i32) {
    %c0_i32 = arith.constant 0 : i32
    %c0_i32_0 = arith.constant 0 : i32
    %c0_i32_1 = arith.constant 0 : i32
    return %c0_i32, %c0_i32_0 : i32, i32
  }
  func.func @transform_5(%arg0: i32) -> (i32, i32) {
    %c0_i32 = arith.constant 0 : i32
    %c0_i32_0 = arith.constant 0 : i32
    %c0_i32_1 = arith.constant 0 : i32
    return %c0_i32, %c0_i32_0 : i32, i32
  }
  func.func @transform_6(%arg0: i32) -> (i32, i32) {
    %c0_i32 = arith.constant 0 : i32
    %c0_i32_0 = arith.constant 0 : i32
    return %arg0, %c0_i32 : i32, i32
  }
}

</mosaic_0001>

<bundles_post_ra>
// kernel: transition_embedder_forward.1
= control target key start
LH: loop header
LB: loop body
LE: loop exit
PB: predicated region body
PF: predicated region fallthrough
CT: control target
= control target key end

     0   :  { %11 = vsyncpa [#allocation3], 0  ;;  %s1688_s21 = smov 0   ;;  %s1903_s0 = inlined_call_operand.vmem [shape: s32[64,8], index: 0, kind: input, shape index: {}]   ;;  %s1904_s1 = inlined_call_operand.vmem [shape: bf16[64,512], index: 1, kind: input, shape index: {}]   ;;  %s1905_s2 = inlined_call_operand.hbm [shape: bf16[512,128], index: 2, kind: input, shape index: {}]   ;;  %s1906_s3 = inlined_call_operand.vmem [shape: bf16[8,128], index: 3, kind: input, shape index: {}]   ;;  %s1907_s4 = inlined_call_operand.vmem [shape: bf16[128,32], index: 4, kind: input, shape index: {}]   ;;  %s1908_s5 = inlined_call_operand.vmem [shape: f32[4,512], index: 5, kind: input, shape index: {}]   ;;  %s1909_s6 = inlined_call_operand.vmem [shape: f32[64,32], index: 6, kind: output, shape index: {}]  }
   0x1 LB: > { %s1315_s22 = sadd.s32 4294967295, %s1641_s21   ;;  %p1317_p0 = scmp.ge.s32.totalorder %s1641_s21, 1  ;;  %s1641_s21 = sphi %s1688_s21, %s17_s21  }
   0x2   : > { %p179_p1 = scmp.lt.s32.totalorder %s1641_s21, 3  ;;  %s1643_s23 = smov [#allocation2]  }
   0x3   : > { %s194_s24 = sshll.u32 %s1643_s23, 4  ;;  %p1700_p3 = scmp.eq.s32.totalorder %s1315_s22, 0  ;;  %s195_s24 = int_to_ptr.vmem [resolvable:$true] %s194_s24 }
   0x4   : > { %p1696_p2 = pnand %p1317_p0, %p179_p1  ;;  %s1616_s27 = scalar_lea.vmem %s195_s24, 4096 }
   0x5   : > { %p1617_p7 = scmp.ne.s32.totalorder %s195_s24, %s1616_s27  ;;  %p1624_p10 = scmp.lt.s32.totalorder %s195_s24, %s195_s24 }
   0x6   : > { %p1501_p4 = pneg %p1696_p2  ;;  %p1625_p11 = scmp.lt.s32.totalorder %s1616_s27, %s1616_s27 }
   0x8   : > { %p1502_p5 = pnand %p1700_p3, %p1501_p4  ;;  %p1626_p12 = por %p1625_p11, %p1624_p10 }
   0xa   : > { %p1607_p6 = pneg %p1502_p5 }
   0xc   : > { %p1619_p8 = pnand %p1617_p7, %p1607_p6 }
   0xe   : > { %p1620_p9 = pneg %p1619_p8 }
  0x10   : > { %p1627_p13 = pnand %p1626_p12, %p1620_p9 }
  0x12   : > { %1630 = shalt.err (!%p1627_p13)
}
  0x13   : > { %s1644_s28 = smov 64   ;;  %s1645_s29 = smov 4  }
  0x14   : > { %1504 = dma.hbm_to_vmem [thread:$0]  (!%p1502_p5), %s1905_s2, 4096, %s195_s24, [#allocation3], %s1644_s28, %s1644_s28, %s1645_s29  }
  0x15   : > { %228 = sbr.rel (%p1696_p2) target bundleno = 828 (0x33c), region = 44 }
  0x1a   : > { %1636 = dma.done.wait (%p1700_p3), [#allocation3], 4096  }
  0x1b   : > { %1638 = vsyncadd (%p1700_p3), [#allocation3], 4294963200  ;;  %s1322_s8 = sshll.u32 %s1315_s22, 2  ;;  %v1646_v0 = vmov 0   ;;  %v1647_v1 = vmov 1   ;;  %v1648_v19 = vmov 2   ;;  %v275_v41 = vlaneseq }
  0x1c   : > { %1525 = vset.pattern.permute.xlu0 %v1646_v0  ;;  %p259_p0 = scmp.lt.s32.totalorder %s1322_s8, 7  ;;  %1526 = vset.pattern.permute.xlu1 %v1647_v1  ;;  %v1541_v6 = vld [vmem:[%s1904_s1 + $0x64] ss:$16 sps:$4 sm:$0xff]   ;;  %v1543_v7 = vld [vmem:[%s1904_s1 + $0x6c] ss:$16 sps:$4 sm:$0xff]   ;;  %v1649_v32 = vmov 3  }
  0x1d   : > { %564 = vmatprep.mubr.bf16.mxu0 %v1646_v0  ;;  %617 = vmatprep.mubr.bf16.mxu1 %v1646_v0  ;;  %v1545_v8 = vld [vmem:[%s1904_s1 + $0x60] ss:$16 sps:$4 sm:$0xff]   ;;  %v1546_v9 = vld [vmem:[%s1904_s1 + $0x68] ss:$16 sps:$4 sm:$0xff]   ;;  %v1547_v12 = vld [vmem:[%s1904_s1 + $0x44] ss:$16 sps:$4 sm:$0xff]  }
  0x1e   : > { %s1913_s8 = smov (!%p259_p0, %s1322_s8), 7  ;;  %540 = vmatprep.subr.bf16.mxu0 %v1541_v6  ;;  %593 = vmatprep.subr.bf16.mxu1 %v1543_v7  ;;  %v1549_v13 = vld [vmem:[%s1904_s1 + $0x4c] ss:$16 sps:$4 sm:$0xff]   ;;  %v1551_v14 = vld [vmem:[%s1904_s1 + $0x40] ss:$16 sps:$4 sm:$0xff]   ;;  %v1650_v36 = vmov 4  }
  0x1f   : > { %s1323_s9 = sshll.u32 %s1913_s8, 3  ;;  %541 = vmatpush1.bf16.msra.mxu0 %v1545_v8  ;;  %594 = vmatpush1.bf16.msra.mxu1 %v1546_v9  ;;  %v1552_v15 = vld [vmem:[%s1904_s1 + $0x48] ss:$16 sps:$4 sm:$0xff]   ;;  %v1553_v18 = vld [vmem:[%s1904_s1 + $0x24] ss:$16 sps:$4 sm:$0xff]   ;;  %vm734_vm0 = vcmask 1043456  }
  0x20   : > { %s262_s12 = scalar_lea.vmem %s1903_s0, %s1323_s9  ;;  %542 = vmatprep.subr.bf16.mxu0 %v1547_v12  ;;  %595 = vmatprep.subr.bf16.mxu1 %v1549_v13  ;;  %v1555_v21 = vld [vmem:[%s1904_s1 + $0x2c] ss:$16 sps:$4 sm:$0xff]   ;;  %v1557_v23 = vld [vmem:[%s1904_s1 + $0x20] ss:$16 sps:$4 sm:$0xff]   ;;  %v1558_v24 = vld [vmem:[%s1904_s1 + $0x28] ss:$16 sps:$4 sm:$0xff]   ;;  %s268_s10 = scalar_lea.vmem %s1909_s6, %s1323_s9 }
  0x21   : > { %v1729_v2 = vld [vmem:[%s262_s12] sm:$0xff]  ;;  %v1731_v3 = vld [vmem:[%s262_s12 + $0x8] sm:$0xff]  ;;  %v1750_v11 = vld [vmem:[%s262_s12 + $0x10] sm:$0xff]  ;;  %v1812_v44 = vand.u32 127, %v275_v41  ;;  %v1651_v50 = vmov 0.0   ;;  %vm525_vm15 = vcmask 523264  }
  0x22   : > { %278 = vperm.xlu0 %1525, %v1729_v2   ;;  %v293_v4 = vadd.s32 16, %v1729_v2  ;;  %v294_v5 = vadd.s32 16, %v1731_v3  ;;  %v317_v10 = vadd.s32 32, %v1729_v2  ;;  %v318_v16 = vadd.s32 32, %v1731_v3  ;;  %v1765_v17 = vld [vmem:[%s262_s12 + $0x18] sm:$0xff]  ;;  %v1569_v57 = vld [vmem:[#allocation2 + $0x70] sm:$0xff]  }
  0x23   : > { %v342_v20 = vadd.s32 48, %v1731_v3  ;;  %v341_v22 = vadd.s32 48, %v1729_v2  ;;  %543 = vmatpush1.bf16.msra.mxu0 %v1551_v14  ;;  %v295_v25 = vadd.s32 16, %v1750_v11  ;;  %v296_v26 = vadd.s32 16, %v1765_v17  ;;  %596 = vmatpush1.bf16.msra.mxu1 %v1552_v15  ;;  %v1559_v28 = vld [vmem:[%s1904_s1 + $0x4] ss:$16 sps:$4 sm:$0xff]  }
  0x24   : > { %298 = vperm.xlu1 %1526, %v293_v4   ;;  %v320_v27 = vadd.s32 32, %v1765_v17  ;;  %544 = vmatprep.subr.bf16.mxu0 %v1553_v18  ;;  %v1561_v29 = vld [vmem:[%s1904_s1 + $0xc] ss:$16 sps:$4 sm:$0xff]   ;;  %v1563_v30 = vld [vmem:[%s1904_s1] ss:$16 sps:$4 sm:$0xff]   ;;  %v319_v33 = vadd.s32 32, %v1750_v11 }
  0x25   : > { %597 = vmatprep.subr.bf16.mxu1 %v1555_v21  ;;  %v1564_v31 = vld [vmem:[%s1904_s1 + $0x8] ss:$16 sps:$4 sm:$0xff]   ;;  %v343_v34 = vadd.s32 48, %v1750_v11  ;;  %v344_v35 = vadd.s32 48, %v1765_v17  ;;  %v726_v37 = vld [vmem:[%s1906_s3] sm:$0xf] }
  0x26   : > { %281 = vperm.xlu0 %1525, %v1731_v3   ;;  %v736_v38 = vsel %vm734_vm0, %v726_v37, 0  ;;  %v1565_v39 = vld [vmem:[#allocation2 + $0x78] sm:$0xff]   ;;  %v1571_v58 = vld [vmem:[#allocation2 + $0x30] sm:$0xff]   ;;  %v1573_v60 = vld [vmem:[#allocation2 + $0x68] sm:$0xff]  }
  0x27   : > { %545 = vmatpush1.bf16.msra.mxu0 %v1557_v23  ;;  %598 = vmatpush1.bf16.msra.mxu1 %v1558_v24  ;;  %v1567_v54 = vld [vmem:[#allocation2 + $0x38] sm:$0xff]   ;;  %v1575_v61 = vld [vmem:[#allocation2 + $0x28] sm:$0xff]   ;;  %v1577_v62 = vld [vmem:[#allocation2 + $0x60] sm:$0xff]  }
  0x28   : > { %301 = vperm.xlu1 %1526, %v294_v5   ;;  %546 = vmatprep.subr.bf16.mxu0 %v1559_v28  ;;  %v1566_v56 = vld [vmem:[#allocation2 + $0xf8] sm:$0xff]   ;;  %v1574_v28 = vld [vmem:[#allocation2 + $0xe8] sm:$0xff]  }
  0x29   : > { %599 = vmatprep.subr.bf16.mxu1 %v1561_v29  ;;  %v1581_v4 = vld [vmem:[#allocation2 + $0x58] sm:$0xff]   ;;  %v1576_v29 = vld [vmem:[#allocation2 + $0xa8] sm:$0xff]  }
  0x2a   : > { %1527 = vset.pattern.permute.xlu0 %v1648_v19  ;;  %v1568_v24 = vld [vmem:[#allocation2 + $0xb8] sm:$0xff]  }
  0x2b   : > { %322 = vperm.xlu0 %1527, %v317_v10   ;;  %547 = vmatpush1.bf16.msra.mxu0 %v1563_v30  ;;  %v1578_v30 = vld [vmem:[#allocation2 + $0xe0] sm:$0xff]  }
  0x2c   : > { %1528 = vset.pattern.permute.xlu1 %v1648_v19  ;;  %600 = vmatpush1.bf16.msra.mxu1 %v1564_v31  ;;  %v1580_v31 = vld [vmem:[#allocation2 + $0xa0] sm:$0xff]  }
  0x2d   : > { %325 = vperm.xlu1 %1528, %v318_v16   ;;  %1496 = vmatprep.subr.msk.bf16.mxu0 %vm734_vm0, %v726_v37  ;;  %v1588_v37 = vld [vmem:[#allocation2 + $0x90] sm:$0xff]  }
  0x2e   : > { %1404 = vmatprep.subr.bf16.mxu1 %v1565_v39  ;;  %v1590_v39 = vld [vmem:[#allocation2 + $0xc8] sm:$0xff]  }
  0x2f   : > { %1530 = vset.pattern.permute.xlu0 %v1649_v32 }
  0x30   : > { %349 = vperm.xlu0 %1530, %v342_v20  }
  0x31   : > { %1529 = vset.pattern.permute.xlu1 %v1649_v32 }
  0x32   : > { %346 = vperm.xlu1 %1529, %v341_v22  }
  0x34   : > { %1532 = vset.pattern.permute.xlu0 %v1647_v1 }
  0x35   : > { %304 = vperm.xlu0 %1532, %v295_v25  }
  0x36   : > { %1531 = vset.pattern.permute.xlu1 %v1646_v0 }
  0x37   : > { %284 = vperm.xlu1 %1531, %v1750_v11  }
  0x39   : > { %1535 = vset.pattern.permute.xlu0 %v1648_v19 }
  0x3a   : > { %331 = vperm.xlu0 %1535, %v320_v27   ;;  %v1572_v27 = vld [vmem:[#allocation2 + $0xb0] sm:$0xff]  }
  0x3b   : > { %287 = vperm.xlu1 %1531, %v1765_v17  }
  0x3e   : > { %1537 = vset.pattern.permute.xlu0 %v1650_v36 }
  0x3f   : > { %1533 = vset.pattern.permute.xlu1 %v1647_v1  ;;  %376 = vperm.xlu0 %1537, %v1729_v2   ;;  %v1579_v1 = vld [vmem:[#allocation2 + $0x20] sm:$0xff]  }
  0x40   : > { %307 = vperm.xlu1 %1533, %v296_v26   ;;  %v1570_v26 = vld [vmem:[#allocation2 + $0xf0] sm:$0xff]  }
  0x43   : > { %385 = vperm.xlu0 %1537, %v1765_v17  }
  0x44   : > { %1534 = vset.pattern.permute.xlu1 %v1648_v19 }
  0x45   : > { %328 = vperm.xlu1 %1534, %v319_v33   ;;  %v1584_v33 = vld [vmem:[#allocation2 + $0x98] sm:$0xff]  }
  0x49   : > { %1536 = vset.pattern.permute.xlu1 %v1649_v32  ;;  %v1582_v32 = vld [vmem:[#allocation2 + $0xd8] sm:$0xff]  }
  0x4a   : > { %352 = vperm.xlu1 %1536, %v343_v34   ;;  %v1585_v34 = vld [vmem:[#allocation2 + $0x50] sm:$0xff]  }
  0x4e   : > { %355 = vperm.xlu1 %1536, %v344_v35   ;;  %v1586_v35 = vld [vmem:[#allocation2 + $0xd0] sm:$0xff]  }
  0x52   : > { %1538 = vset.pattern.permute.xlu1 %v1650_v36  ;;  %v1587_v36 = vld [vmem:[#allocation2 + $0x10] sm:$0xff]  }
  0x53   : > { %379 = vperm.xlu1 %1538, %v1731_v3  }
  0x57   : > { %382 = vperm.xlu1 %1538, %v1750_v11  }
  0x9d   : > { %v279_v40 = vpop.permute.xlu0 %278 }
  0x9e   : > { %vm289_vm1 = vcmp.eq.s32.totalorder %v279_v40, %v1812_v44  ;;  %v1591_v40 = vld [vmem:[#allocation2 + $0x8] sm:$0xff]  }
  0x9f   : > { %v299_v42 = vpop.permute.xlu1 %298 }
  0xa0   : > { %vm309_vm2 = vcmp.eq.s32.totalorder %v299_v42, %v1812_v44  ;;  %v1592_v42 = vld [vmem:[#allocation2 + $0x88] sm:$0xff]  }
  0xa1   : > { %v282_v43 = vpop.permute.xlu0 %281  ;;  %vm313_vm6 = vmor %vm289_vm1, %vm309_vm2 }
  0xa2   : > { %vm290_vm3 = vcmp.eq.s32.totalorder %v282_v43, %v1812_v44  ;;  %v1593_v43 = vld [vmem:[#allocation2 + $0x40] sm:$0xff]  }
  0xa3   : > { %v302_v45 = vpop.permute.xlu1 %301 }
  0xa4   : > { %vm310_vm4 = vcmp.eq.s32.totalorder %v302_v45, %v1812_v44  ;;  %v1595_v45 = vld [vmem:[#allocation2] sm:$0xff]  }
  0xa5   : > { %vm314_vm7 = vmor %vm290_vm3, %vm310_vm4 }
  0xa6   : > { %v323_v46 = vpop.permute.xlu0 %322 }
  0xa7   : > { %vm333_vm8 = vcmp.eq.s32.totalorder %v323_v46, %v1812_v44  ;;  %v1596_v46 = vld [vmem:[#allocation2 + $0x80] sm:$0xff]  }
  0xa8   : > { %v326_v47 = vpop.permute.xlu1 %325  ;;  %vm337_vm12 = vmor %vm313_vm6, %vm333_vm8 }
  0xa9   : > { %vm334_vm5 = vcmp.eq.s32.totalorder %v326_v47, %v1812_v44  ;;  %v1652_v47 = vmov 5  }
  0xaa   : > { %vm338_vm9 = vmor %vm314_vm7, %vm334_vm5  ;;  %1539 = vset.pattern.permute.xlu1 %v1652_v47  ;;  %1540 = vset.pattern.permute.xlu0 %v1652_v47 }
  0xab   : > { %v350_v48 = vpop.permute.xlu0 %349  ;;  %1078 = vperm.xlu1 %1539, %v1729_v2   ;;  %1082 = vperm.xlu0 %1540, %v1731_v3  }
  0xac   : > { %vm358_vm10 = vcmp.eq.s32.totalorder %v350_v48, %v1812_v44  ;;  %v426_v48 = vshrl.u32 %v275_v41, 7 }
  0xad   : > { %vm362_vm11 = vmor %vm338_vm9, %vm358_vm10  ;;  %v347_v49 = vpop.permute.xlu1 %346 }
  0xae   : > { %vm357_vm13 = vcmp.eq.s32.totalorder %v347_v49, %v1812_v44  ;;  %v1327_v51 = vsel %vm362_vm11, 1.0, %v1651_v50  ;;  %v431_v49 = vsub.s32 1, %v426_v48 }
  0xaf   : > { %vm361_vm14 = vmor %vm337_vm12, %vm357_vm13  ;;  %1086 = vperm.xlu1 %1539, %v1750_v11  }
  0xb0   : > { %v1326_v52 = vsel %vm361_vm14, 1.0, %v1651_v50  ;;  %v305_v5 = vpop.permute.xlu0 %304 }
  0xb1   : > { %v373_v53 = vpack.c.bf16 %v1327_v51, %v1326_v52  ;;  %vm311_vm0 = vcmp.eq.s32.totalorder %v305_v5, %v1812_v44  ;;  %v1853_v51 = vsub.s32 0, %v426_v48  ;;  %v435_v52 = vsub.s32 2, %v426_v48 }
  0xb2   : > { %v285_v55 = vpop.permute.xlu1 %284 }
  0xb3   : > { %1353 = vmatmul.mubr.msk.bf16.vlgmr.msra.gmra.mxu0 %vm525_vm15, %v373_v53  ;;  %1355 = vmatmul.mubr.msk.bf16.vlgmr.msra.gmra.mxu1 %vm525_vm15, %v373_v53  ;;  %vm291_vm1 = vcmp.eq.s32.totalorder %v285_v55, %v1812_v44  ;;  %v401_v53 = vld [vmem:[%s1908_s5] ss:$4 sm:$0xf] }
  0xb4   : > { %574 = vmatprep.mubr.bf16.mxu0 %v1646_v0  ;;  %627 = vmatprep.mubr.bf16.mxu1 %v1646_v0  ;;  %v1583_v0 = vld [vmem:[#allocation2 + $0x18] sm:$0xff]   ;;  %vm315_vm4 = vmor %vm291_vm1, %vm311_vm0  ;;  %vm727_vm1 = vcmask 64512   ;;  %v432_v2 = vrot.slane %v401_v53, %v431_v49  ;;  %v428_v3 = vrot.slane %v401_v53, %v1853_v51  ;;  %v436_v11 = vrot.slane %v401_v53, %v435_v52  ;;  %v1598_v52 = vld [vmem:[%s1907_s4 + $0x30] sm:$0xff]  }
  0xb5   : > { %1471 = vmatpush3.bf16.msra.mxu0 %v736_v38  ;;  %1405 = vmatpush3.bf16.msra.mxu1 %v1567_v54  ;;  %v332_v7 = vpop.permute.xlu0 %331  ;;  %v1589_v38 = vld [vmem:[#allocation2 + $0x48] sm:$0xff]  }
  0xb6   : > { %v288_v59 = vpop.permute.xlu1 %287  ;;  %1432 = vmatprep.subr.bf16.mxu0 %v1566_v56  ;;  %1406 = vmatprep.subr.bf16.mxu1 %v1569_v57  ;;  %vm336_vm8 = vcmp.eq.s32.totalorder %v332_v7, %v1812_v44 }
  0xb7   : > { %vm292_vm5 = vcmp.eq.s32.totalorder %v288_v59, %v1812_v44  ;;  %1090 = vperm.xlu1 %1539, %v1765_v17  }
  0xb9   : > { %1407 = vmatpush3.bf16.msra.mxu1 %v1571_v58 }
  0xba   : > { %1408 = vmatprep.subr.bf16.mxu1 %v1573_v60  ;;  %v377_v13 = vpop.permute.xlu0 %376 }
  0xbb   : > { %v308_v63 = vpop.permute.xlu1 %307  ;;  %vm387_vm14 = vcmp.eq.s32.totalorder %v377_v13, %v1812_v44 }
  0xbc   : > { %vm312_vm2 = vcmp.eq.s32.totalorder %v308_v63, %v1812_v44  ;;  %v1330_v15 = vsel %vm387_vm14, 1.0, %v1651_v50 }
  0xbd   : > { %1409 = vmatpush3.bf16.msra.mxu1 %v1575_v61  ;;  %vm316_vm7 = vmor %vm292_vm5, %vm312_vm2 }
  0xbe   : > { %1410 = vmatprep.subr.bf16.mxu1 %v1577_v62  ;;  %vm340_vm11 = vmor %vm316_vm7, %vm336_vm8  ;;  %v386_v19 = vpop.permute.xlu0 %385 }
  0xbf   : > { %vm390_vm2 = vcmp.eq.s32.totalorder %v386_v19, %v1812_v44 }
  0xc0   : > { %v329_v6 = vpop.permute.xlu1 %328  ;;  %v1333_v21 = vsel %vm390_vm2, 1.0, %v1651_v50 }
  0xc1   : > { %1411 = vmatpush3.bf16.msra.mxu1 %v1579_v1  ;;  %vm335_vm3 = vcmp.eq.s32.totalorder %v329_v6, %v1812_v44 }
  0xc2   : > { %1412 = vmatprep.subr.bf16.mxu1 %v1581_v4  ;;  %vm339_vm9 = vmor %vm315_vm4, %vm335_vm3 }
  0xc5   : > { %v353_v8 = vpop.permute.xlu1 %352  ;;  %1413 = vmatpush3.bf16.msra.mxu1 %v1583_v0 }
  0xc6   : > { %vm359_vm6 = vcmp.eq.s32.totalorder %v353_v8, %v1812_v44  ;;  %1414 = vmatprep.subr.bf16.mxu1 %v1585_v34 }
  0xc7   : > { %vm363_vm10 = vmor %vm339_vm9, %vm359_vm6 }
  0xc8   : > { %v1328_v10 = vsel %vm363_vm10, 1.0, %v1651_v50 }
  0xc9   : > { %v356_v9 = vpop.permute.xlu1 %355  ;;  %1415 = vmatpush3.bf16.msra.mxu1 %v1587_v36 }
  0xca   : > { %vm360_vm12 = vcmp.eq.s32.totalorder %v356_v9, %v1812_v44  ;;  %1416 = vmatprep.subr.bf16.mxu1 %v1589_v38 }
  0xcb   : > { %vm364_vm13 = vmor %vm340_vm11, %vm360_vm12 }
  0xcc   : > { %v1329_v12 = vsel %vm364_vm13, 1.0, %v1651_v50 }
  0xcd   : > { %v374_v14 = vpack.c.bf16 %v1329_v12, %v1328_v10  ;;  %1417 = vmatpush3.bf16.msra.mxu1 %v1591_v40 }
  0xce   : > { %v380_v16 = vpop.permute.xlu1 %379  ;;  %1418 = vmatprep.subr.bf16.mxu1 %v1593_v43 }
  0xcf   : > { %1354 = vmatmul.mubr.msk.bf16.gmra.mxu0 %vm525_vm15, %v374_v14  ;;  %1356 = vmatmul.mubr.msk.bf16.gmra.mxu1 %vm525_vm15, %v374_v14  ;;  %vm388_vm0 = vcmp.eq.s32.totalorder %v380_v16, %v1812_v44  ;;  %vm1242_vm15 = vcmask 261120  }
  0xd0   : > { %v1331_v18 = vsel %vm388_vm0, 1.0, %v1651_v50 }
  0xd1   : > { %v399_v20 = vpack.c.bf16 %v1331_v18, %v1330_v15  ;;  %1419 = vmatpush3.bf16.msra.mxu1 %v1595_v45 }
  0xd2   : > { %v383_v22 = vpop.permute.xlu1 %382 }
  0xd3   : > { %vm389_vm3 = vcmp.eq.s32.totalorder %v383_v22, %v1812_v44  ;;  %1472 = vmatprep.mubr.msk.bf16.mxu0 %vm727_vm1, %v399_v20  ;;  %v1594_v44 = vld [vmem:[#allocation2 + $0xc0] sm:$0xff]  }
  0xd4   : > { %v1332_v23 = vsel %vm389_vm3, 1.0, %v1651_v50  ;;  %v439_v50 = vsub.s32 3, %v426_v48 }
  0xd5   : > { %v400_v25 = vpack.c.bf16 %v1333_v21, %v1332_v23 }
  0xd6   : > { %v440_v56 = vrot.slane %v401_v53, %v439_v50  ;;  %v1597_v50 = vld [vmem:[%s1907_s4 + $0x38] sm:$0xff]   ;;  %v1599_v53 = vld [vmem:[%s1907_s4 + $0x28] sm:$0xff]  }
  0xd7   : > { %1473 = vmatmul.mubr.msk.bf16.vlgmr.msra.gmra.mxu0 %vm727_vm1, %v400_v25  ;;  %1476 = vmatprep.subr.bf16.mxu1 %v1597_v50 }
  0xd8   : > { %1433 = vmatpush3.bf16.msra.mxu0 %v1568_v24 }
  0xd9   : > { %1434 = vmatprep.subr.bf16.mxu0 %v1570_v26 }
  0xdc   : > { %1435 = vmatpush3.bf16.msra.mxu0 %v1572_v27 }
  0xdd   : > { %1436 = vmatprep.subr.bf16.mxu0 %v1574_v28 }
  0xe0   : > { %1437 = vmatpush3.bf16.msra.mxu0 %v1576_v29 }
  0xe1   : > { %1438 = vmatprep.subr.bf16.mxu0 %v1578_v30 }
  0xe4   : > { %1439 = vmatpush3.bf16.msra.mxu0 %v1580_v31 }
  0xe5   : > { %1440 = vmatprep.subr.bf16.mxu0 %v1582_v32 }
  0xe8   : > { %1441 = vmatpush3.bf16.msra.mxu0 %v1584_v33 }
  0xe9   : > { %1442 = vmatprep.subr.bf16.mxu0 %v1586_v35 }
  0xec   : > { %1443 = vmatpush3.bf16.msra.mxu0 %v1588_v37 }
  0xed   : > { %1444 = vmatprep.subr.bf16.mxu0 %v1590_v39 }
  0xf0   : > { %1445 = vmatpush3.bf16.msra.mxu0 %v1592_v42 }
  0xf1   : > { %1446 = vmatprep.subr.bf16.mxu0 %v1594_v44 }
  0xf4   : > { %1447 = vmatpush3.bf16.msra.mxu0 %v1596_v46 }
 0x173   : > { %v566_v54 = vpop.f32.mrf.mxu0  ;;  %v619_v55 = vpop.f32.mrf.mxu1 }
 0x174   : > { %v567_v63 = vadd.f32 %v566_v54, %v428_v3  ;;  %v620_v1 = vadd.f32 %v619_v55, %v436_v11  ;;  %v1600_v54 = vld [vmem:[%s1907_s4 + $0x20] sm:$0xff]   ;;  %v1601_v55 = vld [vmem:[%s1907_s4 + $0x18] sm:$0xff]  }
 0x175   : > { %v568_v57 = vpop.f32.mrf.mxu0  ;;  %v621_v17 = vpop.f32.mrf.mxu1 }
 0x176   : > { %v569_v59 = vadd.f32 %v568_v57, %v432_v2  ;;  %v622_v60 = vadd.f32 %v621_v17, %v440_v56  ;;  %v638_v14 = vmax.f32 %v567_v63, 0.0  ;;  %v640_v15 = vmax.f32 %v620_v1, 0.0 }
 0x177   : > { %v570_v58 = vpop.f32.mrf.mxu0  ;;  %v623_v41 = vpop.f32.mrf.mxu1 }
 0x178   : > { %v571_v61 = vadd.f32 %v570_v58, %v428_v3  ;;  %v624_v62 = vadd.f32 %v623_v41, %v436_v11  ;;  %v639_v9 = vmax.f32 %v569_v59, 0.0  ;;  %v641_v10 = vmax.f32 %v622_v60, 0.0  ;;  %v1334_v41 = vld [vmem:[%s1908_s5 + $0x1] ss:$4 sm:$0xf] }
 0x179   : > { %v572_v4 = vpop.f32.mrf.mxu0  ;;  %v625_v5 = vpop.f32.mrf.mxu1 }
 0x17a   : > { %v573_v6 = vadd.f32 %v572_v4, %v432_v2  ;;  %v626_v0 = vadd.f32 %v625_v5, %v440_v56  ;;  %v642_v7 = vmax.f32 %v571_v61, 0.0  ;;  %v644_v8 = vmax.f32 %v624_v62, 0.0  ;;  %v1079_v62 = vpop.permute.xlu1 %1078 }
 0x17b   : > { %v1097_v61 = vrot.slane %v1334_v41, %v1853_v51 }
 0x17c   : > { %v643_v12 = vmax.f32 %v573_v6, 0.0  ;;  %v645_v13 = vmax.f32 %v626_v0, 0.0  ;;  %v654_v19 = vpack.c.bf16 %v642_v7, %v638_v14  ;;  %v656_v20 = vpack.c.bf16 %v644_v8, %v640_v15  ;;  %v1335_v8 = vld [vmem:[%s1908_s5 + $0x2] ss:$4 sm:$0xf] }
 0x17e   : > { %v655_v16 = vpack.c.bf16 %v643_v12, %v639_v9  ;;  %v657_v18 = vpack.c.bf16 %v645_v13, %v641_v10  ;;  %v1099_v9 = vmul.f32 %v1097_v61, %v1079_v62  ;;  %v1083_v10 = vpop.permute.xlu0 %1082 }
 0x180   : > { %1011 = vmatprep.mubr.bf16.mxu1 %v655_v16  ;;  %1060 = vmatprep.mubr.bf16.mxu0 %v657_v18  ;;  %v1111_v16 = vrot.slane %v1335_v8, %v1853_v51 }
 0x181   : > { %1012 = vmatmul.mubr.bf16.vlgmr.msra.gmra.mxu1 %v654_v19  ;;  %1061 = vmatmul.mubr.bf16.vlgmr.msra.gmra.mxu0 %v656_v20 }
 0x182   : > { %1477 = vmatpush3.bf16.msra.mxu1 %v1597_v50 }
 0x183   : > { %1478 = vmatprep.subr.bf16.mxu1 %v1598_v52 }
 0x186   : > { %1479 = vmatpush3.bf16.msra.mxu1 %v1598_v52 }
 0x187   : > { %1480 = vmatprep.subr.bf16.mxu1 %v1599_v53 }
 0x18a   : > { %1481 = vmatpush3.bf16.msra.mxu1 %v1599_v53 }
 0x18b   : > { %1482 = vmatprep.subr.bf16.mxu1 %v1600_v54 }
 0x18e   : > { %1483 = vmatpush3.bf16.msra.mxu1 %v1600_v54 }
 0x18f   : > { %v576_v21 = vpop.f32.mrf.mxu0  ;;  %v629_v22 = vpop.f32.mrf.mxu1  ;;  %1484 = vmatprep.subr.bf16.mxu1 %v1601_v55 }
 0x190   : > { %v577_v31 = vadd.f32 %v576_v21, %v428_v3  ;;  %v630_v32 = vadd.f32 %v629_v22, %v436_v11  ;;  %v1100_v21 = vmul.f32 %v1097_v61, %v1083_v10 }
 0x191   : > { %v578_v23 = vpop.f32.mrf.mxu0  ;;  %v631_v24 = vpop.f32.mrf.mxu1 }
 0x192   : > { %v579_v27 = vadd.f32 %v578_v23, %v432_v2  ;;  %v632_v28 = vadd.f32 %v631_v24, %v440_v56  ;;  %v646_v44 = vmax.f32 %v577_v31, 0.0  ;;  %v648_v45 = vmax.f32 %v630_v32, 0.0  ;;  %1485 = vmatpush3.bf16.msra.mxu1 %v1601_v55  ;;  %v1087_v31 = vpop.permute.xlu1 %1086 }
 0x193   : > { %v580_v25 = vpop.f32.mrf.mxu0  ;;  %v633_v26 = vpop.f32.mrf.mxu1 }
 0x194   : > { %v581_v29 = vadd.f32 %v580_v25, %v428_v3  ;;  %v634_v30 = vadd.f32 %v633_v26, %v436_v11  ;;  %v647_v39 = vmax.f32 %v579_v27, 0.0  ;;  %v649_v40 = vmax.f32 %v632_v28, 0.0  ;;  %v1604_v3 = vld [vmem:[%s1907_s4] sm:$0xff]  }
 0x195   : > { %v582_v33 = vpop.f32.mrf.mxu0  ;;  %v635_v34 = vpop.f32.mrf.mxu1 }
 0x196   : > { %v583_v35 = vadd.f32 %v582_v33, %v432_v2  ;;  %v636_v36 = vadd.f32 %v635_v34, %v440_v56  ;;  %v650_v37 = vmax.f32 %v581_v29, 0.0  ;;  %v652_v38 = vmax.f32 %v634_v30, 0.0  ;;  %v1602_v2 = vld [vmem:[%s1907_s4 + $0x10] sm:$0xff]   ;;  %v1603_v56 = vld [vmem:[%s1907_s4 + $0x8] sm:$0xff]  }
 0x197   : > { %1486 = vmatprep.subr.bf16.mxu1 %v1602_v2  ;;  %v1474_v11 = vpop.f32.mrf.mxu0 }
 0x198   : > { %v651_v42 = vmax.f32 %v583_v35, 0.0  ;;  %v653_v43 = vmax.f32 %v636_v36, 0.0  ;;  %v658_v48 = vpack.c.bf16 %v650_v37, %v646_v44  ;;  %v660_v49 = vpack.c.bf16 %v652_v38, %v648_v45  ;;  %1487 = vmatpush3.bf16.msra.mxu1 %v1602_v2  ;;  %v1091_v45 = vpop.permute.xlu1 %1090 }
 0x199   : > { %1488 = vmatprep.subr.bf16.mxu1 %v1603_v56  ;;  %v772_v57 = vpop.f32.mrf.mxu0 }
 0x19a   : > { %v659_v46 = vpack.c.bf16 %v651_v42, %v647_v39  ;;  %v661_v47 = vpack.c.bf16 %v653_v43, %v649_v40  ;;  %v1101_v42 = vmul.f32 %v1097_v61, %v1087_v31 }
 0x19b   : > { %v1475_v17 = vpop.f32.mrf.mxu0 }
 0x19c   : > { %1019 = vmatprep.mubr.bf16.mxu1 %v659_v46  ;;  %1068 = vmatprep.mubr.bf16.mxu0 %v661_v47 }
 0x19d   : > { %1020 = vmatmul.mubr.bf16.gmra.mxu1 %v658_v48  ;;  %1069 = vmatmul.mubr.bf16.gmra.mxu0 %v660_v49  ;;  %v775_v58 = vpop.f32.mrf.mxu0  ;;  %v1102_v49 = vmul.f32 %v1097_v61, %v1091_v45 }
 0x19e   : > { %1489 = vmatpush3.bf16.msra.mxu1 %v1603_v56 }
 0x19f   : > { %1490 = vmatprep.subr.bf16.mxu1 %v1604_v3 }
 0x1a2   : > { %1491 = vmatpush3.bf16.msra.mxu1 %v1604_v3  ;;  %v1336_v3 = vld [vmem:[%s1908_s5 + $0x3] ss:$4 sm:$0xf] }
 0x241   : > { %v1420_v59 = vpop.f32.mrf.mxu1  ;;  %v1448_v60 = vpop.f32.mrf.mxu0 }
 0x243   : > { %v1421_v63 = vpop.f32.mrf.mxu1  ;;  %v1449_v1 = vpop.f32.mrf.mxu0 }
 0x244   : > { %v1422_v4 = vadd.f32 %v1421_v63, %v1420_v59  ;;  %v1450_v7 = vadd.f32 %v1449_v1, %v1448_v60 }
 0x245   : > { %v1423_v5 = vpop.f32.mrf.mxu1  ;;  %v1451_v6 = vpop.f32.mrf.mxu0 }
 0x246   : > { %v1014_v0 = vadd.f32 %v1422_v4, %v772_v57  ;;  %v1143_v57 = vrot.slane %v1336_v3, %v1853_v51 }
 0x247   : > { %v1424_v12 = vpop.f32.mrf.mxu1  ;;  %v1452_v13 = vpop.f32.mrf.mxu0 }
 0x248   : > { %v1063_v14 = vadd.f32 %v1450_v7, %v1014_v0  ;;  %v1425_v15 = vadd.f32 %v1424_v12, %v1423_v5  ;;  %v1453_v19 = vadd.f32 %v1452_v13, %v1451_v6 }
 0x24a   : > { %v1017_v18 = vadd.f32 %v1425_v15, %v775_v58  ;;  %v1103_v20 = vadd.f32 %v1099_v9, %v1063_v14 }
 0x24c   : > { %v1066_v22 = vadd.f32 %v1453_v19, %v1017_v18  ;;  %v1113_v23 = vadd.f32 %v1111_v16, %v1103_v20 }
 0x24e   : > { %v1104_v24 = vadd.f32 %v1100_v21, %v1066_v22  ;;  %v1117_v26 = vmax.f32 %v1113_v23, 0.0 }
 0x250   : > { %v1114_v25 = vadd.f32 %v1111_v16, %v1104_v24 }
 0x252   : > { %v1118_v27 = vmax.f32 %v1114_v25, 0.0 }
 0x254   : > { %v1121_v28 = vpack.c.bf16 %v1118_v27, %v1117_v26 }
 0x256   : > { %1492 = vmatprep.mubr.bf16.mxu1 %v1121_v28 }
 0x25d   : > { %v1426_v29 = vpop.f32.mrf.mxu1  ;;  %v1454_v30 = vpop.f32.mrf.mxu0 }
 0x25f   : > { %v1427_v32 = vpop.f32.mrf.mxu1  ;;  %v1455_v33 = vpop.f32.mrf.mxu0 }
 0x260   : > { %v1428_v34 = vadd.f32 %v1427_v32, %v1426_v29  ;;  %v1456_v38 = vadd.f32 %v1455_v33, %v1454_v30 }
 0x261   : > { %v1429_v35 = vpop.f32.mrf.mxu1  ;;  %v1457_v36 = vpop.f32.mrf.mxu0 }
 0x262   : > { %v1022_v37 = vadd.f32 %v1474_v11, %v1428_v34 }
 0x263   : > { %v1430_v39 = vpop.f32.mrf.mxu1  ;;  %v1458_v40 = vpop.f32.mrf.mxu0 }
 0x264   : > { %v1071_v43 = vadd.f32 %v1456_v38, %v1022_v37  ;;  %v1431_v44 = vadd.f32 %v1430_v39, %v1429_v35  ;;  %v1459_v48 = vadd.f32 %v1458_v40, %v1457_v36 }
 0x266   : > { %v1105_v46 = vadd.f32 %v1101_v42, %v1071_v43  ;;  %v1025_v47 = vadd.f32 %v1475_v17, %v1431_v44 }
 0x268   : > { %v1074_v50 = vadd.f32 %v1459_v48, %v1025_v47  ;;  %v1115_v52 = vadd.f32 %v1111_v16, %v1105_v46 }
 0x26a   : > { %v1106_v53 = vadd.f32 %v1102_v49, %v1074_v50  ;;  %v1119_v55 = vmax.f32 %v1115_v52, 0.0 }
 0x26c   : > { %v1116_v54 = vadd.f32 %v1111_v16, %v1106_v53 }
 0x26e   : > { %v1120_v2 = vmax.f32 %v1116_v54, 0.0 }
 0x270   : > { %v1122_v56 = vpack.c.bf16 %v1120_v2, %v1119_v55 }
 0x272   : > { %1493 = vmatmul.mubr.bf16.vlgmr.msra.gmra.mxu1 %v1122_v56 }
 0x332   : > { %v1494_v11 = vpop.f32.mrf.mxu1 }
 0x333   : > { %v1236_v61 = vadd.f32 %v1494_v11, %v1143_v57 }
 0x334   : > { %v1227_v17 = vpop.f32.mrf.mxu1 }
 0x335   : > { %v1228_v58 = vadd.f32 %v1227_v17, %v1143_v57  ;;  %1245 = vst.msk [vmem:[%s268_s10 + $0x10] sm:$0xff] %vm1242_vm15, %v1236_v61 }
 0x336   : > { %v1495_v41 = vpop.f32.mrf.mxu1 }
 0x337   : > { %1243 = vst.msk [vmem:[%s268_s10] sm:$0xff] %vm1242_vm15, %v1228_v58  ;;  %v1239_v62 = vadd.f32 %v1495_v41, %v1143_v57 }
 0x338   : > { %v1230_v59 = vpop.f32.mrf.mxu1 }
 0x339   : > { %v1231_v60 = vadd.f32 %v1230_v59, %v1143_v57  ;;  %1246 = vst.msk [vmem:[%s268_s10 + $0x18] sm:$0xff] %vm1242_vm15, %v1239_v62 }
 0x33b   : > { %1244 = vst.msk [vmem:[%s268_s10 + $0x8] sm:$0xff] %vm1242_vm15, %v1231_v60 }
 0x33c PF: > { %s17_s21 = sadd.s32 1, %s1641_s21  }
 0x33d   : > { %p14_p1 = scmp.ge.s32.totalorder %s17_s21, 4  }
 0x33f   :  { %16 = sbr.rel (!%p14_p1) target bundleno = 1 (0x1), region = 82 }
 0x344   :  { %1269 = vsyncpa [#allocation3], 1 }
 0x345   :  { %1271 = vsyncpa [#allocation3 + $0x1], 1 }

</bundles_post_ra>
